<compile_context>
chip_gen: v7x
topology: tpu7x:2x2x1
jax: 0.10.0
libtpu: 0.0.40
codegen_flags: <defaults>
</compile_context>

<pallas_src>
import functools

import jax
import jax.numpy as jnp
import numpy as np
from jax.experimental import pallas as pl
from jax.experimental.pallas import tpu as pltpu


def _round_up(x, m):
    return (x + m - 1) // m * m


def _pick_tile_n(n, target=256):
    """Rows per grid step: >=2 steps when possible (v7x has 2 TensorCores),
    a multiple of 8 (sublane), capped at `target` to bound VMEM/temp size."""
    half = _round_up(-(-n // 2), 8)          # round_up(ceil(n/2), 8)
    return max(8, min(target, half))


def _split_f32_to_bf16x3(t_f32):
    """Split f32 -> (hi, mid, lo) bf16 planes with hi + mid + lo == t exactly.

    Truncation-based split: each piece is exactly bf16-representable and the
    f32 reconstruction hi + mid + lo is exact for normal values, so a one-hot
    bf16 MXU matmul against the three planes (accumulated in f32) reproduces
    the gathered f32 rows bit-exactly.
    """
    mask = jnp.uint32(0xFFFF0000)
    hi = jax.lax.bitcast_convert_type(
        jax.lax.bitcast_convert_type(t_f32, jnp.uint32) & mask, jnp.float32)
    r1 = t_f32 - hi
    mid = jax.lax.bitcast_convert_type(
        jax.lax.bitcast_convert_type(r1, jnp.uint32) & mask, jnp.float32)
    lo = r1 - mid
    return (hi.astype(jnp.bfloat16), mid.astype(jnp.bfloat16),
            lo.astype(jnp.bfloat16))


# ---------------------------------------------------------------------------
# Kernel: fused quantize + one-hot MXU gather against a VMEM-resident table.
# ---------------------------------------------------------------------------
def _encode_kernel(loc_ref, t_hi_ref, t_mid_ref, t_lo_ref, out_ref, *,
                   side_num, side_len, v_pad):
    # loc_ref : (tile_n, 2) f32      locations block
    # t_*_ref : (v_pad, D)  bf16     embedding-table planes, VMEM-resident
    # out_ref : (tile_n, D)          output block
    eps = 1e-8
    loc = loc_ref[...].astype(jnp.float32) + side_len / 2.0
    loc = jnp.clip(loc, eps, side_len - eps)
    # jnp.round is round-half-to-even, matching torch.round
    q = jnp.round(loc * (side_num - 1) / side_len).astype(jnp.int32)
    ids = q[:, 0:1] * side_num + q[:, 1:2]                       # (tile_n, 1)

    cols = jax.lax.broadcasted_iota(jnp.int32, (ids.shape[0], v_pad), 1)
    onehot = (ids == cols).astype(jnp.bfloat16)                  # (tile_n, v_pad)

    # Three bf16 MXU matmuls, f32 accumulation -> exact f32 row reconstruction.
    acc = jnp.dot(onehot, t_hi_ref[...], preferred_element_type=jnp.float32)
    acc = acc + jnp.dot(onehot, t_mid_ref[...], preferred_element_type=jnp.float32)
    acc = acc + jnp.dot(onehot, t_lo_ref[...], preferred_element_type=jnp.float32)
    out_ref[...] = acc.astype(out_ref.dtype)


# ---------------------------------------------------------------------------
# Pure-JAX reference (mirrors the PyTorch forward); also the large-table fallback.
# ---------------------------------------------------------------------------
def _reference(locations, pos_emb, side_num, side_len):
    eps = 1e-8
    loc = locations + side_len / 2.0
    loc = jnp.clip(loc, eps, side_len - eps)
    q = jnp.round(loc * (side_num - 1) / side_len).astype(jnp.int32)
    ids = q[:, 0] * side_num + q[:, 1]
    return jnp.take(pos_emb, ids, axis=0)


# ---------------------------------------------------------------------------
# Wrapper
# ---------------------------------------------------------------------------
def learn_interp_pos_encode_2d(locations, pos_emb, *, side_num, side_len,
                               tile_n=None, vmem_table_budget=24 << 20):
    N, two = locations.shape
    assert two == 2
    V, D = pos_emb.shape
    assert V == side_num ** 2

    v_pad = _round_up(V, 128)                 # lane-dense MXU contraction dim
    # 3 bf16 planes; pipeline may double-buffer -> 2x in the budget.
    table_bytes = 3 * v_pad * D * 2 * 2
    if table_bytes > vmem_table_budget:
        # TODO(synk): very large tables (>24 MiB resident) should keep an HBM
        # row-gather path (coalesced per-wave semaphore waits + deep DMA
        # lookahead); fall back to an XLA gather here.
        return _reference(locations.astype(jnp.float32), pos_emb, side_num,
                          float(side_len))

    if tile_n is None:
        tile_n = _pick_tile_n(N)
    n_pad = _round_up(N, tile_n)

    # Pad N up to a grid multiple (padded rows quantize to a valid id and are
    # trimmed at the end); pad the table rows up to v_pad with zeros.
    loc = jnp.zeros((n_pad, 2), jnp.float32).at[:N].set(
        locations.astype(jnp.float32))
    table = jnp.pad(pos_emb.astype(jnp.float32), ((0, v_pad - V), (0, 0)))
    t_hi, t_mid, t_lo = _split_f32_to_bf16x3(table)

    kernel = functools.partial(_encode_kernel, side_num=side_num,
                               side_len=float(side_len), v_pad=v_pad)
    table_spec = pl.BlockSpec((v_pad, D), lambda i: (0, 0))   # resident in VMEM
    out = pl.pallas_call(
        kernel,
        out_shape=jax.ShapeDtypeStruct((n_pad, D), pos_emb.dtype),
        grid_spec=pltpu.PrefetchScalarGridSpec(
            num_scalar_prefetch=0,
            grid=(n_pad // tile_n,),
            in_specs=[pl.BlockSpec((tile_n, 2), lambda i: (i, 0)),
                      table_spec, table_spec, table_spec],
            out_specs=pl.BlockSpec((tile_n, D), lambda i: (i, 0)),
        ),
        compiler_params=pltpu.CompilerParams(
            dimension_semantics=("parallel",),                # shard tiles across TCs
            vmem_limit_bytes=int(max(32 << 20, table_bytes + (8 << 20))),
        ),
    )(loc, t_hi, t_mid, t_lo)
    return out[:N]


if __name__ == "__main__":
    side_num = 8          # grid resolution per side -> V = 64 embeddings
    vec_len = 32          # embedding dim
    side_len = 16.0       # physical side length
    N = 100               # not a multiple of the tile -> exercises pad + trim

    key = jax.random.PRNGKey(0)
    k_loc, k_emb = jax.random.split(key)

    # Deterministic "parameters": nn.Embedding(side_num**2, vec_len).weight ~ N(0, 1)
    pos_emb = jax.random.normal(k_emb, (side_num ** 2, vec_len), dtype=jnp.float32)

    # Locations in [-side_len/2, side_len/2], as the module's shift implies.
    locations = jax.random.uniform(
        k_loc, (N, 2), dtype=jnp.float32,
        minval=-side_len / 2.0, maxval=side_len / 2.0,
    )

    out = learn_interp_pos_encode_2d(
        locations, pos_emb, side_num=side_num, side_len=side_len
    )
    out = jax.block_until_ready(out)

    ref = _reference(locations, pos_emb, side_num, side_len)
    # The 3-plane bf16 split makes the one-hot MXU gather reconstruct the f32
    # rows exactly; tolerance kept only as a numerical safety margin.
    np.testing.assert_allclose(np.asarray(out), np.asarray(ref),
                               rtol=1e-6, atol=1e-6)

    print("KERNEL_OK")
</pallas_src>

<mosaic_0001>
module attributes {stable_mosaic.version = 11 : i64} {
  func.func @_encode_kernel(%arg0: i32, %arg1: memref<56x2xf32, #tpu.memory_space<vmem>>, %arg2: memref<128x32xbf16, #tpu.memory_space<vmem>>, %arg3: memref<128x32xbf16, #tpu.memory_space<vmem>>, %arg4: memref<128x32xbf16, #tpu.memory_space<vmem>>, %arg5: memref<56x32xf32, #tpu.memory_space<vmem>>) attributes {dimension_semantics = [#tpu.dimension_semantics<parallel>], iteration_bounds = array<i64: 2>, scalar_prefetch = 0 : i64, scratch_operands = 0 : i64, tpu.core_type = #tpu.core_type<tc>, window_params = [{transform_indices = @transform_0, window_bounds = array<i64: 56, 2>}, {pipeline_mode = #tpu.pipeline_mode<synchronous>, transform_indices = @transform_1, window_bounds = array<i64: 128, 32>}, {pipeline_mode = #tpu.pipeline_mode<synchronous>, transform_indices = @transform_2, window_bounds = array<i64: 128, 32>}, {pipeline_mode = #tpu.pipeline_mode<synchronous>, transform_indices = @transform_3, window_bounds = array<i64: 128, 32>}, {transform_indices = @transform_4, window_bounds = array<i64: 56, 32>}]} {
    %c0 = arith.constant 0 : index
    %c0_0 = arith.constant 0 : index
    %0 = vector.load %arg1[%c0, %c0_0] : memref<56x2xf32, #tpu.memory_space<vmem>>, vector<56x2xf32>
    %cst = arith.constant 8.000000e+00 : f32
    %1 = vector.broadcast %cst : f32 to vector<56x2xf32>
    %2 = arith.addf %0, %1 : vector<56x2xf32>
    %cst_1 = arith.constant 9.99999993E-9 : f32
    %cst_2 = arith.constant 1.600000e+01 : f32
    %3 = vector.broadcast %cst_1 : f32 to vector<56x2xf32>
    %4 = arith.maximumf %3, %2 : vector<56x2xf32>
    %5 = vector.broadcast %cst_2 : f32 to vector<56x2xf32>
    %6 = arith.minimumf %5, %4 : vector<56x2xf32>
    %cst_3 = arith.constant 7.000000e+00 : f32
    %7 = vector.broadcast %cst_3 : f32 to vector<56x2xf32>
    %8 = arith.mulf %6, %7 : vector<56x2xf32>
    %cst_4 = arith.constant 1.600000e+01 : f32
    %9 = vector.broadcast %cst_4 : f32 to vector<56x2xf32>
    %10 = arith.divf %8, %9 : vector<56x2xf32>
    %11 = math.roundeven %10 : vector<56x2xf32>
    %12 = arith.fptosi %11 : vector<56x2xf32> to vector<56x2xi32>
    %13 = vector.extract_strided_slice %12 {offsets = [0, 0], sizes = [56, 1], strides = [1, 1]} : vector<56x2xi32> to vector<56x1xi32>
    %c8_i32 = arith.constant 8 : i32
    %14 = vector.broadcast %c8_i32 : i32 to vector<56x1xi32>
    %15 = arith.muli %13, %14 : vector<56x1xi32>
    %16 = vector.extract_strided_slice %12 {offsets = [0, 1], sizes = [56, 1], strides = [1, 1]} : vector<56x2xi32> to vector<56x1xi32>
    %17 = arith.addi %15, %16 : vector<56x1xi32>
    %18 = tpu.iota {dimensions = array<i32: 1>} : vector<56x128xi32>
    %19 = vector.broadcast %17 : vector<56x1xi32> to vector<56x128xi32>
    %20 = arith.cmpi eq, %19, %18 : vector<56x128xi32>
    %21 = arith.extui %20 : vector<56x128xi1> to vector<56x128xi32>
    %22 = arith.sitofp %21 : vector<56x128xi32> to vector<56x128xf32>
    %23 = arith.truncf %22 : vector<56x128xf32> to vector<56x128xbf16>
    %c0_5 = arith.constant 0 : index
    %c0_6 = arith.constant 0 : index
    %24 = vector.load %arg2[%c0_5, %c0_6] : memref<128x32xbf16, #tpu.memory_space<vmem>>, vector<128x32xbf16>
    %cst_7 = arith.constant dense<0.000000e+00> : vector<56x32xf32>
    %25 = tpu.matmul %23, %24, %cst_7 {dimension_numbers = #tpu.dot_dimension_numbers<[1], [0], [0], [1], [0, 0, 1, 1], [], []>} : vector<56x128xbf16>, vector<128x32xbf16>, vector<56x32xf32> -> vector<56x32xf32>
    %c0_8 = arith.constant 0 : index
    %c0_9 = arith.constant 0 : index
    %26 = vector.load %arg3[%c0_8, %c0_9] : memref<128x32xbf16, #tpu.memory_space<vmem>>, vector<128x32xbf16>
    %cst_10 = arith.constant dense<0.000000e+00> : vector<56x32xf32>
    %27 = tpu.matmul %23, %26, %cst_10 {dimension_numbers = #tpu.dot_dimension_numbers<[1], [0], [0], [1], [0, 0, 1, 1], [], []>} : vector<56x128xbf16>, vector<128x32xbf16>, vector<56x32xf32> -> vector<56x32xf32>
    %28 = arith.addf %25, %27 : vector<56x32xf32>
    %c0_11 = arith.constant 0 : index
    %c0_12 = arith.constant 0 : index
    %29 = vector.load %arg4[%c0_11, %c0_12] : memref<128x32xbf16, #tpu.memory_space<vmem>>, vector<128x32xbf16>
    %cst_13 = arith.constant dense<0.000000e+00> : vector<56x32xf32>
    %30 = tpu.matmul %23, %29, %cst_13 {dimension_numbers = #tpu.dot_dimension_numbers<[1], [0], [0], [1], [0, 0, 1, 1], [], []>} : vector<56x128xbf16>, vector<128x32xbf16>, vector<56x32xf32> -> vector<56x32xf32>
    %31 = arith.addf %28, %30 : vector<56x32xf32>
    %c0_14 = arith.constant 0 : index
    %c0_15 = arith.constant 0 : index
    %32 = vector.load %arg5[%c0_14, %c0_15] : memref<56x32xf32, #tpu.memory_space<vmem>>, vector<56x32xf32>
    tpu.vector_store %arg5[%c0_14, %c0_15], %31 {strides = array<i32>} : memref<56x32xf32, #tpu.memory_space<vmem>>, vector<56x32xf32>,
    return
  }
  func.func @transform_0(%arg0: i32) -> (i32, i32) {
    %c0_i32 = arith.constant 0 : i32
    %c0_i32_0 = arith.constant 0 : i32
    return %arg0, %c0_i32 : i32, i32
  }
  func.func @transform_1(%arg0: i32) -> (i32, i32) {
    %c0_i32 = arith.constant 0 : i32
    %c0_i32_0 = arith.constant 0 : i32
    %c0_i32_1 = arith.constant 0 : i32
    return %c0_i32, %c0_i32_0 : i32, i32
  }
  func.func @transform_2(%arg0: i32) -> (i32, i32) {
    %c0_i32 = arith.constant 0 : i32
    %c0_i32_0 = arith.constant 0 : i32
    %c0_i32_1 = arith.constant 0 : i32
    return %c0_i32, %c0_i32_0 : i32, i32
  }
  func.func @transform_3(%arg0: i32) -> (i32, i32) {
    %c0_i32 = arith.constant 0 : i32
    %c0_i32_0 = arith.constant 0 : i32
    %c0_i32_1 = arith.constant 0 : i32
    return %c0_i32, %c0_i32_0 : i32, i32
  }
  func.func @transform_4(%arg0: i32) -> (i32, i32) {
    %c0_i32 = arith.constant 0 : i32
    %c0_i32_0 = arith.constant 0 : i32
    return %arg0, %c0_i32 : i32, i32
  }
}

</mosaic_0001>

<bundles_post_ra>
// kernel: tpu_custom_call.1
= control target key start
LH: loop header
LB: loop body
LE: loop exit
PB: predicated region body
PF: predicated region fallthrough
CT: control target
= control target key end

     0   :  { %s1079_s15 = smov 0   ;;  %s1234_s0 = inlined_call_operand.vmem [shape: f32[112,2], index: 0, kind: input, shape index: {}]   ;;  %s1235_s1 = inlined_call_operand.vmem [shape: bf16[128,32], index: 1, kind: input, shape index: {}]   ;;  %s1236_s2 = inlined_call_operand.vmem [shape: bf16[128,32], index: 2, kind: input, shape index: {}]   ;;  %s1237_s3 = inlined_call_operand.vmem [shape: bf16[128,32], index: 3, kind: input, shape index: {}]   ;;  %s1238_s4 = inlined_call_operand.vmem [shape: f32[112,32], index: 4, kind: output, shape index: {}]  }
   0x1 LB: > { %s783_s16 = sadd.s32 4294967295, %s1049_s15   ;;  %p787_p0 = scmp.ge.s32.totalorder %s1049_s15, 1  ;;  %s1049_s15 = sphi %s1079_s15, %s14_s15  }
   0x2   : > { %p163_p1 = scmp.lt.s32.totalorder %s1049_s15, 3 }
   0x4   : > { %p164_p2 = pnand %p787_p0, %p163_p1 }
   0x5   : > { %s189_s17 = smul.u32 (!%p164_p2), 7, %s783_s16  ;;  %v1051_v9 = vmov (!%p164_p2), 0   ;;  %s1052_s22 = smov (!%p164_p2), 127   ;;  %v1019_v46 = vld [vmem:[%s1236_s2] sm:$0xff] (!%p164_p2)   ;;  %v1021_v48 = vld [vmem:[%s1236_s2 + $0x8] sm:$0xff] (!%p164_p2)   ;;  %v1023_v53 = vld [vmem:[%s1236_s2 + $0x10] sm:$0xff] (!%p164_p2)  }
   0x6   : > { %167 = sbr.rel (%p164_p2) target bundleno = 535 (0x217), region = 36  ;;  %1017 = vset.pattern.permute.xlu1 (!%p164_p2), %v1051_v9  ;;  %1018 = vset.pattern.permute.xlu0 (!%p164_p2), %v1051_v9  ;;  %v1020_v47 = vld [vmem:[%s1235_s1] sm:$0xff] (!%p164_p2)   ;;  %v1022_v49 = vld [vmem:[%s1235_s1 + $0x8] sm:$0xff] (!%p164_p2)   ;;  %v1024_v54 = vld [vmem:[%s1235_s1 + $0x10] sm:$0xff] (!%p164_p2)   ;;  %vm719_vm11 = vcmask (!%p164_p2), 261120  }
   0x7   : > { %p190_p3 = scmp.lt.s32.totalorder (!%p164_p2), %s189_s17, 13  ;;  %883 = vmatprep.subr.bf16.mxu1 (!%p164_p2), %v1019_v46  ;;  %907 = vmatprep.subr.bf16.mxu0 (!%p164_p2), %v1020_v47  ;;  %v1025_v56 = vld [vmem:[%s1236_s2 + $0x18] sm:$0xff] (!%p164_p2)   ;;  %v1027_v58 = vld [vmem:[%s1236_s2 + $0x20] sm:$0xff] (!%p164_p2)   ;;  %v1029_v60 = vld [vmem:[%s1236_s2 + $0x28] sm:$0xff] (!%p164_p2)  }
   0x8   : > { %884 = vmatpush3.bf16.msra.mxu1 (!%p164_p2), %v1019_v46  ;;  %908 = vmatpush3.bf16.msra.mxu0 (!%p164_p2), %v1020_v47  ;;  %v1026_v57 = vld [vmem:[%s1235_s1 + $0x18] sm:$0xff] (!%p164_p2)   ;;  %v1028_v59 = vld [vmem:[%s1235_s1 + $0x20] sm:$0xff] (!%p164_p2)   ;;  %v1030_v61 = vld [vmem:[%s1235_s1 + $0x28] sm:$0xff] (!%p164_p2)  }
   0x9   : > { %885 = vmatprep.subr.bf16.mxu1 (!%p164_p2), %v1021_v48  ;;  %909 = vmatprep.subr.bf16.mxu0 (!%p164_p2), %v1022_v49 }
   0xc   : > { %886 = vmatpush3.bf16.msra.mxu1 (!%p164_p2), %v1021_v48  ;;  %910 = vmatpush3.bf16.msra.mxu0 (!%p164_p2), %v1022_v49 }
   0xd   : > { %s1246_s17 = smov (!%p190_p3, %s189_s17), 13  ;;  %887 = vmatprep.subr.bf16.mxu1 %v1023_v53  ;;  %911 = vmatprep.subr.bf16.mxu0 %v1024_v54 }
   0xe   : > { %s788_s18 = sshll.u32 %s1246_s17, 3 }
   0xf   : > { %s193_s21 = scalar_lea.vmem %s1234_s0, %s788_s18  ;;  %s199_s27 = scalar_lea.vmem %s1238_s4, %s788_s18 }
  0x10   : > { %v202_v0 = vld [vmem:[%s193_s21] sm:$0xff]  ;;  %v204_v1 = vld [vmem:[%s193_s21 + $0x10] sm:$0xff]  ;;  %v203_v2 = vld [vmem:[%s193_s21 + $0x8] sm:$0xff]  ;;  %888 = vmatpush3.bf16.msra.mxu1 %v1023_v53  ;;  %912 = vmatpush3.bf16.msra.mxu0 %v1024_v54 }
  0x11   : > { %v209_v3 = vadd.f32 8.0, %v202_v0  ;;  %v211_v4 = vadd.f32 8.0, %v204_v1  ;;  %v210_v5 = vadd.f32 8.0, %v203_v2  ;;  %v205_v6 = vld [vmem:[%s193_s21 + $0x18] sm:$0xff]  ;;  %v206_v7 = vld [vmem:[%s193_s21 + $0x20] sm:$0xff]  ;;  %v207_v8 = vld [vmem:[%s193_s21 + $0x28] sm:$0xff]  ;;  %889 = vmatprep.subr.bf16.mxu1 %v1025_v56  ;;  %913 = vmatprep.subr.bf16.mxu0 %v1026_v57 }
  0x12   : > { %v212_v10 = vadd.f32 8.0, %v205_v6  ;;  %v213_v11 = vadd.f32 8.0, %v206_v7  ;;  %v214_v12 = vadd.f32 8.0, %v207_v8  ;;  %v208_v13 = vld [vmem:[%s193_s21 + $0x30] sm:$0xff] }
  0x13   : > { %v216_v14 = vmax.f32 %v209_v3, 1e-08  ;;  %v218_v15 = vmax.f32 %v211_v4, 1e-08  ;;  %v217_v16 = vmax.f32 %v210_v5, 1e-08 }
  0x14   : > { %v219_v17 = vmax.f32 %v212_v10, 1e-08  ;;  %v220_v18 = vmax.f32 %v213_v11, 1e-08  ;;  %v221_v19 = vmax.f32 %v214_v12, 1e-08  ;;  %890 = vmatpush3.bf16.msra.mxu1 %v1025_v56  ;;  %914 = vmatpush3.bf16.msra.mxu0 %v1026_v57 }
  0x15   : > { %v223_v20 = vmin.f32 %v216_v14, 16.0  ;;  %v225_v21 = vmin.f32 %v218_v15, 16.0  ;;  %v224_v22 = vmin.f32 %v217_v16, 16.0  ;;  %v215_v23 = vadd.f32 8.0, %v208_v13  ;;  %891 = vmatprep.subr.bf16.mxu1 %v1027_v58  ;;  %915 = vmatprep.subr.bf16.mxu0 %v1028_v59  ;;  %v1031_v4 = vld [vmem:[%s1236_s2 + $0x30] sm:$0xff]   ;;  %v1033_v12 = vld [vmem:[%s1236_s2 + $0x38] sm:$0xff]  }
  0x16   : > { %v226_v24 = vmin.f32 %v219_v17, 16.0  ;;  %v227_v25 = vmin.f32 %v220_v18, 16.0  ;;  %v228_v26 = vmin.f32 %v221_v19, 16.0  ;;  %v1032_v5 = vld [vmem:[%s1235_s1 + $0x30] sm:$0xff]   ;;  %v1034_v13 = vld [vmem:[%s1235_s1 + $0x38] sm:$0xff]  }
  0x17   : > { %v230_v27 = vmul.f32 7.0, %v223_v20  ;;  %v232_v28 = vmul.f32 7.0, %v225_v21  ;;  %v231_v29 = vmul.f32 7.0, %v224_v22  ;;  %v222_v30 = vmax.f32 %v215_v23, 1e-08  ;;  %v1035_v20 = vld [vmem:[%s1237_s3] sm:$0xff]  }
  0x18   : > { %v233_v31 = vmul.f32 7.0, %v226_v24  ;;  %v234_v32 = vmul.f32 7.0, %v227_v25  ;;  %v235_v33 = vmul.f32 7.0, %v228_v26  ;;  %892 = vmatpush3.bf16.msra.mxu1 %v1027_v58  ;;  %916 = vmatpush3.bf16.msra.mxu0 %v1028_v59  ;;  %v280_v24 = vlaneseq }
  0x19   : > { %v238_v34 = vmul.f32 0.0625, %v230_v27  ;;  %v240_v35 = vmul.f32 0.0625, %v232_v28  ;;  %v1095_v36 = vmul.f32 0.0625, %v231_v29  ;;  %v229_v37 = vmin.f32 %v222_v30, 16.0  ;;  %893 = vmatprep.subr.bf16.mxu1 %v1029_v60  ;;  %917 = vmatprep.subr.bf16.mxu0 %v1030_v61 }
  0x1a   : > { %v1097_v38 = vmul.f32 0.0625, %v233_v31  ;;  %v1099_v41 = vmul.f32 0.0625, %v234_v32  ;;  %v1105_v44 = vmul.f32 0.0625, %v235_v33  ;;  %v281_v26 = vand.u32 127, %v280_v24  ;;  %v1036_v33 = vld [vmem:[%s1237_s3 + $0x8] sm:$0xff]  }
  0x1b   : > { %v987_v39 = vcvt.f32.s32 %v238_v34  ;;  %v993_v40 = vcvt.f32.s32 %v240_v35  ;;  %v990_v42 = vcvt.f32.s32 %v1095_v36  ;;  %v236_v45 = vmul.f32 7.0, %v229_v37  ;;  %v1037_v37 = vld [vmem:[%s1237_s3 + $0x10] sm:$0xff]  }
  0x1c   : > { %v996_v43 = vcvt.f32.s32 %v1097_v38  ;;  %v999_v50 = vcvt.f32.s32 %v1099_v41  ;;  %v1002_v51 = vcvt.f32.s32 %v1105_v44  ;;  %894 = vmatpush3.bf16.msra.mxu1 %v1029_v60  ;;  %918 = vmatpush3.bf16.msra.mxu0 %v1030_v61  ;;  %v1053_v30 = vmov 1.0|1.0   ;;  %v1040_v41 = vld [vmem:[%s1237_s3 + $0x28] sm:$0xff]  }
  0x1d   : > { %259 = vrot.lane.b32.xlu0 %v987_v39, %s1052_s22  ;;  %263 = vrot.lane.b32.xlu1 %v993_v40, %s1052_s22  ;;  %v1123_v52 = vmul.f32 0.0625, %v236_v45  ;;  %v252_v62 = vmul.u32 8, %v987_v39  ;;  %v254_v63 = vmul.u32 8, %v993_v40  ;;  %v1038_v39 = vld [vmem:[%s1237_s3 + $0x18] sm:$0xff]   ;;  %v1039_v40 = vld [vmem:[%s1237_s3 + $0x20] sm:$0xff]  }
  0x1e   : > { %v253_v3 = vmul.u32 8, %v990_v42  ;;  %v255_v7 = vmul.u32 8, %v996_v43  ;;  %895 = vmatprep.subr.bf16.mxu1 %v1031_v4  ;;  %919 = vmatprep.subr.bf16.mxu0 %v1032_v5 }
  0x1f   : > { %v1005_v55 = vcvt.f32.s32 %v1123_v52  ;;  %v256_v11 = vmul.u32 8, %v999_v50  ;;  %v257_v15 = vmul.u32 8, %v1002_v51 }
  0x20   : > { %896 = vmatpush3.bf16.msra.mxu1 %v1031_v4  ;;  %920 = vmatpush3.bf16.msra.mxu0 %v1032_v5 }
  0x21   : > { %261 = vrot.lane.b32.xlu0 %v990_v42, %s1052_s22  ;;  %265 = vrot.lane.b32.xlu1 %v996_v43, %s1052_s22  ;;  %v258_v19 = vmul.u32 8, %v1005_v55  ;;  %v1041_v42 = vld [vmem:[%s1237_s3 + $0x30] sm:$0xff]   ;;  %v1042_v43 = vld [vmem:[%s1237_s3 + $0x38] sm:$0xff]  }
  0x22   : > { %897 = vmatprep.subr.bf16.mxu1 %v1033_v12  ;;  %921 = vmatprep.subr.bf16.mxu0 %v1034_v13 }
  0x24   : > { %898 = vmatpush3.bf16.msra.mxu1 %v1033_v12  ;;  %922 = vmatpush3.bf16.msra.mxu0 %v1034_v13 }
  0x25   : > { %267 = vrot.lane.b32.xlu0 %v999_v50, %s1052_s22  ;;  %269 = vrot.lane.b32.xlu1 %v1002_v51, %s1052_s22 }
  0x26   : > { %931 = vmatprep.subr.bf16.mxu0 %v1035_v20  ;;  %955 = vmatprep.subr.bf16.mxu1 %v1035_v20 }
  0x29   : > { %271 = vrot.lane.b32.xlu0 %v1005_v55, %s1052_s22 }
  0x8f   : > { %v260_v0 = vpop.permute.xlu0 %259  ;;  %v264_v1 = vpop.permute.xlu1 %263 }
  0x90   : > { %v273_v2 = vadd.s32 %v260_v0, %v252_v62  ;;  %v275_v6 = vadd.s32 %v264_v1, %v254_v63 }
  0x92   : > { %283 = vperm.xlu1 %1017, %v273_v2  }
  0x93   : > { %v262_v8 = vpop.permute.xlu0 %261  ;;  %v266_v9 = vpop.permute.xlu1 %265 }
  0x94   : > { %v274_v10 = vadd.s32 %v262_v8, %v253_v3  ;;  %v276_v14 = vadd.s32 %v266_v9, %v255_v7 }
  0x96   : > { %286 = vperm.xlu0 %1018, %v274_v10   ;;  %289 = vperm.xlu1 %1017, %v275_v6  }
  0x97   : > { %v268_v16 = vpop.permute.xlu0 %267  ;;  %v270_v17 = vpop.permute.xlu1 %269 }
  0x98   : > { %v277_v18 = vadd.s32 %v268_v16, %v256_v11  ;;  %v278_v21 = vadd.s32 %v270_v17, %v257_v15 }
  0x9a   : > { %295 = vperm.xlu0 %1018, %v277_v18   ;;  %292 = vperm.xlu1 %1017, %v276_v14  }
  0x9b   : > { %v272_v22 = vpop.permute.xlu0 %271 }
  0x9c   : > { %v279_v23 = vadd.s32 %v272_v22, %v258_v19 }
  0x9e   : > { %301 = vperm.xlu0 %1018, %v279_v23   ;;  %298 = vperm.xlu1 %1017, %v278_v21  }
 0x111   : > { %v284_v25 = vpop.permute.xlu1 %283 }
 0x112   : > { %vm303_vm0 = vcmp.eq.s32.totalorder %v284_v25, %v281_v26 }
 0x115   : > { %v287_v27 = vpop.permute.xlu0 %286  ;;  %v290_v28 = vpop.permute.xlu1 %289 }
 0x116   : > { %vm304_vm1 = vcmp.eq.s32.totalorder %v287_v27, %v281_v26  ;;  %vm305_vm3 = vcmp.eq.s32.totalorder %v290_v28, %v281_v26 }
 0x117   : > { %vm1168_vm2 = vmpackc.low %vm304_vm1, %vm303_vm0 }
 0x118   : > { %899 = vmatprep.mubr.msk.bf16.mxu1 %vm1168_vm2, %v1053_v30  ;;  %923 = vmatprep.mubr.msk.bf16.mxu0 %vm1168_vm2, %v1053_v30 }
 0x119   : > { %v296_v31 = vpop.permute.xlu0 %295  ;;  %v293_v32 = vpop.permute.xlu1 %292 }
 0x11a   : > { %vm306_vm4 = vcmp.eq.s32.totalorder %v293_v32, %v281_v26  ;;  %vm307_vm7 = vcmp.eq.s32.totalorder %v296_v31, %v281_v26 }
 0x11b   : > { %vm1179_vm5 = vmpackc.low %vm306_vm4, %vm305_vm3 }
 0x11c   : > { %900 = vmatmul.mubr.msk.bf16.vlgmr.msra.gmra.mrb[0].mxu1 %vm1179_vm5, %v1053_v30  ;;  %924 = vmatmul.mubr.msk.bf16.vlgmr.msra.gmra.mrb[0].mxu0 %vm1179_vm5, %v1053_v30 }
 0x11d   : > { %932 = vmatpush3.bf16.msra.mxu0 %v1035_v20  ;;  %963 = vmatpush3.bf16.msra.mxu1 %v1035_v20  ;;  %v302_v35 = vpop.permute.xlu0 %301  ;;  %v299_v36 = vpop.permute.xlu1 %298 }
 0x11e   : > { %vm308_vm6 = vcmp.eq.s32.totalorder %v299_v36, %v281_v26  ;;  %933 = vmatprep.subr.bf16.mxu0 %v1036_v33  ;;  %956 = vmatprep.subr.bf16.mxu1 %v1036_v33  ;;  %vm309_vm8 = vcmp.eq.s32.totalorder %v302_v35, %v281_v26 }
 0x11f   : > { %vm809_vm9 = vmpackc.low %vm308_vm6, %vm307_vm7 }
 0x120   : > { %903 = vmatprep.mubr.msk.bf16.mxu1 %vm809_vm9, %v1053_v30  ;;  %927 = vmatprep.mubr.msk.bf16.mxu0 %vm809_vm9, %v1053_v30  ;;  %vm1190_vm10 = vmpackc.low %vm309_vm8, %vm309_vm8 }
 0x121   : > { %934 = vmatpush3.bf16.msra.mxu0 %v1036_v33  ;;  %964 = vmatpush3.bf16.msra.mxu1 %v1036_v33 }
 0x122   : > { %935 = vmatprep.subr.bf16.mxu0 %v1037_v37  ;;  %957 = vmatprep.subr.bf16.mxu1 %v1037_v37 }
 0x124   : > { %904 = vmatmul.mubr.msk.bf16.gmra.mrb[4].mxu1 %vm1190_vm10, %v1053_v30  ;;  %928 = vmatmul.mubr.msk.bf16.gmra.mrb[4].mxu0 %vm1190_vm10, %v1053_v30 }
 0x125   : > { %947 = vmatprep.mubr.msk.bf16.mxu0 %vm1168_vm2, %v1053_v30  ;;  %951 = vmatprep.mubr.msk.bf16.mxu1 %vm809_vm9, %v1053_v30 }
 0x126   : > { %936 = vmatpush3.bf16.msra.mxu0 %v1037_v37  ;;  %965 = vmatpush3.bf16.msra.mxu1 %v1037_v37 }
 0x127   : > { %937 = vmatprep.subr.bf16.mxu0 %v1038_v39  ;;  %958 = vmatprep.subr.bf16.mxu1 %v1038_v39 }
 0x12a   : > { %938 = vmatpush3.bf16.msra.mxu0 %v1038_v39  ;;  %966 = vmatpush3.bf16.msra.mxu1 %v1038_v39 }
 0x12b   : > { %939 = vmatprep.subr.bf16.mxu0 %v1039_v40  ;;  %959 = vmatprep.subr.bf16.mxu1 %v1039_v40 }
 0x12e   : > { %940 = vmatpush3.bf16.msra.mxu0 %v1039_v40  ;;  %967 = vmatpush3.bf16.msra.mxu1 %v1039_v40 }
 0x12f   : > { %941 = vmatprep.subr.bf16.mxu0 %v1040_v41  ;;  %960 = vmatprep.subr.bf16.mxu1 %v1040_v41 }
 0x132   : > { %942 = vmatpush3.bf16.msra.mxu0 %v1040_v41  ;;  %968 = vmatpush3.bf16.msra.mxu1 %v1040_v41 }
 0x133   : > { %943 = vmatprep.subr.bf16.mxu0 %v1041_v42  ;;  %961 = vmatprep.subr.bf16.mxu1 %v1041_v42 }
 0x136   : > { %944 = vmatpush3.bf16.msra.mxu0 %v1041_v42  ;;  %969 = vmatpush3.bf16.msra.mxu1 %v1041_v42 }
 0x137   : > { %945 = vmatprep.subr.bf16.mxu0 %v1042_v43  ;;  %962 = vmatprep.subr.bf16.mxu1 %v1042_v43 }
 0x13a   : > { %946 = vmatpush3.bf16.msra.mxu0 %v1042_v43  ;;  %970 = vmatpush3.bf16.msra.mxu1 %v1042_v43 }
 0x13d   : > { %948 = vmatmul.mubr.msk.bf16.vlgmr.msra.gmra.mrb[0].mxu0 %vm1179_vm5, %v1053_v30  ;;  %952 = vmatmul.mubr.msk.bf16.vlgmr.msra.gmra.mrb[8].mxu1 %vm1190_vm10, %v1053_v30 }
 0x1ef   : > { %v901_v44 = vpop.f32.mrb[0].mxu1 }
 0x1f0   : > { %v442_v45 = vpop.f32.mrb[1].mxu1 }
 0x1f1   : > { %v902_v46 = vpop.f32.mrb[2].mxu1 }
 0x1f2   : > { %v445_v47 = vpop.f32.mrb[3].mxu1 }
 0x1f7   : > { %v905_v48 = vpop.f32.mrb[4].mxu1  ;;  %v929_v49 = vpop.f32.mrb[4].mxu0 }
 0x1f8   : > { %v579_v50 = vadd.f32 %v929_v49, %v905_v48  ;;  %v458_v51 = vpop.f32.mrb[5].mxu1  ;;  %v570_v52 = vpop.f32.mrb[5].mxu0 }
 0x1f9   : > { %v571_v53 = vadd.f32 %v570_v52, %v458_v51  ;;  %v906_v54 = vpop.f32.mrb[6].mxu1  ;;  %v930_v55 = vpop.f32.mrb[6].mxu0 }
 0x1fa   : > { %v461_v56 = vpop.f32.mrb[7].mxu1  ;;  %v573_v57 = vpop.f32.mrb[7].mxu0 }
 0x1fb   : > { %v574_v58 = vadd.f32 %v573_v57, %v461_v56 }
 0x210   : > { %v949_v59 = vpop.f32.mrb[0].mxu0  ;;  %v953_v60 = vpop.f32.mrb[8].mxu1 }
 0x211   : > { %v971_v61 = vadd.f32 %v949_v59, %v901_v44  ;;  %v718_v62 = vadd.f32 %v953_v60, %v579_v50  ;;  %v682_v63 = vpop.f32.mrb[1].mxu0  ;;  %v698_v0 = vpop.f32.mrb[9].mxu1 }
 0x212   : > { %v972_v1 = vadd.f32 %v682_v63, %v442_v45  ;;  %v716_v2 = vadd.f32 %v698_v0, %v571_v53  ;;  %v950_v3 = vpop.f32.mrb[2].mxu0  ;;  %v954_v4 = vpop.f32.mrb[10].mxu1 }
 0x213   : > { %722 = vst.msk [vmem:[%s199_s27 + $0x10] sm:$0xff] %vm719_vm11, %v971_v61  ;;  %726 = vst.msk [vmem:[%s199_s27 + $0x30] sm:$0xff] %vm719_vm11, %v718_v62  ;;  %v973_v5 = vadd.f32 %v950_v3, %v902_v46  ;;  %v685_v6 = vpop.f32.mrb[3].mxu0  ;;  %v701_v7 = vpop.f32.mrb[11].mxu1 }
 0x214   : > { %720 = vst.msk [vmem:[%s199_s27] sm:$0xff] %vm719_vm11, %v972_v1  ;;  %724 = vst.msk [vmem:[%s199_s27 + $0x20] sm:$0xff] %vm719_vm11, %v716_v2  ;;  %v974_v8 = vadd.f32 %v685_v6, %v445_v47  ;;  %v717_v9 = vadd.f32 %v701_v7, %v574_v58 }
 0x215   : > { %723 = vst.msk [vmem:[%s199_s27 + $0x18] sm:$0xff] %vm719_vm11, %v973_v5 }
 0x216   : > { %721 = vst.msk [vmem:[%s199_s27 + $0x8] sm:$0xff] %vm719_vm11, %v974_v8  ;;  %725 = vst.msk [vmem:[%s199_s27 + $0x28] sm:$0xff] %vm719_vm11, %v717_v9 }
 0x217 PF: > { %s14_s15 = sadd.s32 1, %s1049_s15  }
 0x218   : > { %p11_p4 = scmp.ge.s32.totalorder %s14_s15, 4  }
 0x21a   :  { %13 = sbr.rel (!%p11_p4) target bundleno = 1 (0x1), region = 66 }

</bundles_post_ra>
